<compile_context>
chip_gen: v7x
topology: tpu7x:2x2x1
jax: 0.10.0
libtpu: 0.0.40
codegen_flags: <defaults>
</compile_context>

<pallas_src>
import functools
import math

import jax
import jax.numpy as jnp
from jax.experimental import pallas as pl
from jax.experimental.pallas import tpu as pltpu

# ---- small, module-consistent sizes -----------------------------------------
B = 2            # batch
N = 16           # sequence length (number of positions)
POS_DIM = 4      # pos_dim
D = 32           # pos_embed_dim (must be even)
OMEGA = 1.0
LN_EPS = 1e-12


# ---- Pallas kernel -----------------------------------------------------------
def sinu_pos_embed_kernel(x_ref, p_ref, out_ref, *, pos_dim):
    # x_ref: (tile, pos_dim)
    # p_ref: (pos_dim + 4, D)  rows = [omega*w_0 .. omega*w_{P-1},
    #                                  omega*bias, gamma, beta, lane_phase]
    # out_ref: (tile, D)
    x = x_ref[...]
    p = p_ref[...]

    bias  = p[pos_dim     : pos_dim + 1, :]   # (1, D), already scaled by omega
    gamma = p[pos_dim + 1 : pos_dim + 2, :]
    beta  = p[pos_dim + 2 : pos_dim + 3, :]
    phase = p[pos_dim + 3 : pos_dim + 4, :]   # (lane & 1) * pi/2

    # Linear layer as VPU broadcast-FMAs (K = pos_dim is tiny; MXU would be ~0% util).
    # t = omega * (x @ w + b) + phase, built as (tile,1)*(1,D) outer-product adds.
    t = bias + phase                                   # (1, D)
    for k in range(pos_dim):                           # static, unrolled
        t = t + x[:, k:k + 1] * p[k:k + 1, :]          # -> (tile, D)

    # sin on even lanes, cos on odd lanes, via a single phase-shifted sin.
    mix = jnp.sin(t)

    # LayerNorm over the feature (lane) axis, eps = 1e-12, affine.
    # One-pass stats: var = E[x^2] - E[x]^2  (|mix| <= 1, numerically safe).
    mu  = jnp.mean(mix, axis=-1, keepdims=True)
    ms  = jnp.mean(mix * mix, axis=-1, keepdims=True)
    var = jnp.maximum(ms - mu * mu, 0.0)
    out = (mix - mu) * jax.lax.rsqrt(var + LN_EPS) * gamma + beta

    out_ref[...] = out.astype(out_ref.dtype)


# ---- wrapper -----------------------------------------------------------------
def learned_sinu_pos_embed(pos_normed, w, b, gamma, beta, *, omega=OMEGA,
                           max_rows_tile=1024):
    bsz, n, p = pos_normed.shape
    d = w.shape[1]
    rows = bsz * n
    x2 = pos_normed.reshape(rows, p).astype(jnp.float32)   # fold batch+seq onto rows

    # Pack every parameter (and the per-lane sin/cos phase) into ONE VMEM input.
    phase = ((jnp.arange(d, dtype=jnp.int32) & 1).astype(jnp.float32)
             * jnp.float32(math.pi / 2.0))
    params = jnp.concatenate(
        [jnp.float32(omega) * w.astype(jnp.float32),            # (p, d)
         jnp.float32(omega) * b.reshape(1, d).astype(jnp.float32),
         gamma.reshape(1, d).astype(jnp.float32),
         beta.reshape(1, d).astype(jnp.float32),
         phase.reshape(1, d)],
        axis=0)                                                  # (p + 4, d)

    # Row tile: multiple of 8, capped; pad rows so the grid divides evenly.
    tile = min(max_rows_tile, rows)
    tile = max(8, ((tile + 7) // 8) * 8)
    padded_rows = pl.cdiv(rows, tile) * tile
    if padded_rows != rows:
        x2 = jnp.pad(x2, ((0, padded_rows - rows), (0, 0)))
    grid = (padded_rows // tile,)

    out2 = pl.pallas_call(
        functools.partial(sinu_pos_embed_kernel, pos_dim=p),
        out_shape=jax.ShapeDtypeStruct((padded_rows, d), jnp.float32),
        grid_spec=pltpu.PrefetchScalarGridSpec(
            num_scalar_prefetch=0,
            grid=grid,
            in_specs=[
                pl.BlockSpec((tile, p), lambda i: (i, 0)),        # row tile of x
                pl.BlockSpec((p + 4, d), lambda i: (0, 0)),       # packed params
            ],
            out_specs=pl.BlockSpec((tile, d), lambda i: (i, 0)),
        ),
        compiler_params=pltpu.CompilerParams(
            dimension_semantics=("parallel",)),                    # shard rows on v7x
    )(x2, params)

    return out2[:rows].reshape(bsz, n, d)


# ---- pure-JAX reference (mirrors the torch forward literally) ------------------
def reference(pos_normed, w, b, gamma, beta, *, omega=OMEGA):
    e = jnp.dot(pos_normed, w, precision=jax.lax.Precision.HIGHEST) + b   # (B, N, D)
    s = jnp.sin(omega * e[:, :, 0::2])
    c = jnp.cos(omega * e[:, :, 1::2])
    mix = jnp.stack((s, c), axis=3).reshape(e.shape)        # interleave sin/cos
    mu = mix.mean(-1, keepdims=True)
    var = jnp.square(mix - mu).mean(-1, keepdims=True)
    return (mix - mu) * jax.lax.rsqrt(var + LN_EPS) * gamma + beta


# ---- main ---------------------------------------------------------------------
if __name__ == "__main__":
    assert D % 2 == 0
    key = jax.random.PRNGKey(0)
    ks = jax.random.split(key, 6)

    pos_normed = jax.random.normal(ks[0], (B, N, POS_DIM), jnp.float32)

    init = lambda k, shape: (0.2 * jax.random.normal(k, shape)).astype(jnp.float32)
    w = init(ks[1], (POS_DIM, D))            # pos_fc weight (in x out layout)
    b = init(ks[2], (1, D))                  # pos_fc bias
    gamma = 1.0 + 0.1 * jax.random.normal(ks[3], (1, D), jnp.float32)  # LN gamma
    beta = init(ks[4], (1, D))               # LN beta

    out = learned_sinu_pos_embed(pos_normed, w, b, gamma, beta)
    out = jax.block_until_ready(out)

    ref = reference(pos_normed, w, b, gamma, beta)
    assert out.shape == (B, N, D)
    assert jnp.allclose(out, ref, atol=3e-5, rtol=3e-5), (
        f"max abs diff {jnp.max(jnp.abs(out - ref))}")

    print("KERNEL_OK")
</pallas_src>

<mosaic_0001>
module attributes {stable_mosaic.version = 11 : i64} {
  func.func @sinu_pos_embed_kernel(%arg0: i32, %arg1: memref<32x4xf32, #tpu.memory_space<vmem>>, %arg2: memref<8x32xf32, #tpu.memory_space<vmem>>, %arg3: memref<32x32xf32, #tpu.memory_space<vmem>>) attributes {dimension_semantics = [#tpu.dimension_semantics<parallel>], iteration_bounds = array<i64: 1>, scalar_prefetch = 0 : i64, scratch_operands = 0 : i64, tpu.core_type = #tpu.core_type<tc>, window_params = [{transform_indices = @transform_0, window_bounds = array<i64: 32, 4>}, {pipeline_mode = #tpu.pipeline_mode<synchronous>, transform_indices = @transform_1, window_bounds = array<i64: 8, 32>}, {transform_indices = @transform_2, window_bounds = array<i64: 32, 32>}]} {
    %c0 = arith.constant 0 : index
    %c0_0 = arith.constant 0 : index
    %0 = vector.load %arg1[%c0, %c0_0] : memref<32x4xf32, #tpu.memory_space<vmem>>, vector<32x4xf32>
    %c0_1 = arith.constant 0 : index
    %c0_2 = arith.constant 0 : index
    %1 = vector.load %arg2[%c0_1, %c0_2] : memref<8x32xf32, #tpu.memory_space<vmem>>, vector<8x32xf32>
    %2 = vector.extract_strided_slice %1 {offsets = [4, 0], sizes = [1, 32], strides = [1, 1]} : vector<8x32xf32> to vector<1x32xf32>
    %3 = vector.extract_strided_slice %1 {offsets = [5, 0], sizes = [1, 32], strides = [1, 1]} : vector<8x32xf32> to vector<1x32xf32>
    %4 = vector.extract_strided_slice %1 {offsets = [6, 0], sizes = [1, 32], strides = [1, 1]} : vector<8x32xf32> to vector<1x32xf32>
    %5 = vector.extract_strided_slice %1 {offsets = [7, 0], sizes = [1, 32], strides = [1, 1]} : vector<8x32xf32> to vector<1x32xf32>
    %6 = arith.addf %2, %5 : vector<1x32xf32>
    %7 = vector.extract_strided_slice %0 {offsets = [0, 0], sizes = [32, 1], strides = [1, 1]} : vector<32x4xf32> to vector<32x1xf32>
    %8 = vector.extract_strided_slice %1 {offsets = [0, 0], sizes = [1, 32], strides = [1, 1]} : vector<8x32xf32> to vector<1x32xf32>
    %9 = vector.broadcast %7 : vector<32x1xf32> to vector<32x32xf32>
    %10 = vector.broadcast %8 : vector<1x32xf32> to vector<32x32xf32>
    %11 = arith.mulf %9, %10 : vector<32x32xf32>
    %12 = vector.broadcast %6 : vector<1x32xf32> to vector<32x32xf32>
    %13 = arith.addf %12, %11 : vector<32x32xf32>
    %14 = vector.extract_strided_slice %0 {offsets = [0, 1], sizes = [32, 1], strides = [1, 1]} : vector<32x4xf32> to vector<32x1xf32>
    %15 = vector.extract_strided_slice %1 {offsets = [1, 0], sizes = [1, 32], strides = [1, 1]} : vector<8x32xf32> to vector<1x32xf32>
    %16 = vector.broadcast %14 : vector<32x1xf32> to vector<32x32xf32>
    %17 = vector.broadcast %15 : vector<1x32xf32> to vector<32x32xf32>
    %18 = arith.mulf %16, %17 : vector<32x32xf32>
    %19 = arith.addf %13, %18 : vector<32x32xf32>
    %20 = vector.extract_strided_slice %0 {offsets = [0, 2], sizes = [32, 1], strides = [1, 1]} : vector<32x4xf32> to vector<32x1xf32>
    %21 = vector.extract_strided_slice %1 {offsets = [2, 0], sizes = [1, 32], strides = [1, 1]} : vector<8x32xf32> to vector<1x32xf32>
    %22 = vector.broadcast %20 : vector<32x1xf32> to vector<32x32xf32>
    %23 = vector.broadcast %21 : vector<1x32xf32> to vector<32x32xf32>
    %24 = arith.mulf %22, %23 : vector<32x32xf32>
    %25 = arith.addf %19, %24 : vector<32x32xf32>
    %26 = vector.extract_strided_slice %0 {offsets = [0, 3], sizes = [32, 1], strides = [1, 1]} : vector<32x4xf32> to vector<32x1xf32>
    %27 = vector.extract_strided_slice %1 {offsets = [3, 0], sizes = [1, 32], strides = [1, 1]} : vector<8x32xf32> to vector<1x32xf32>
    %28 = vector.broadcast %26 : vector<32x1xf32> to vector<32x32xf32>
    %29 = vector.broadcast %27 : vector<1x32xf32> to vector<32x32xf32>
    %30 = arith.mulf %28, %29 : vector<32x32xf32>
    %31 = arith.addf %25, %30 : vector<32x32xf32>
    %32 = math.sin %31 : vector<32x32xf32>
    %cst = arith.constant dense<0.000000e+00> : vector<32xf32>
    %33 = vector.multi_reduction <add>, %32, %cst [1] : vector<32x32xf32> to vector<32xf32>
    %34 = vector.shape_cast %33 : vector<32xf32> to vector<32x1xf32>
    %cst_3 = arith.constant 3.200000e+01 : f32
    %35 = vector.broadcast %cst_3 : f32 to vector<32x1xf32>
    %36 = arith.divf %34, %35 : vector<32x1xf32>
    %37 = arith.mulf %32, %32 : vector<32x32xf32>
    %cst_4 = arith.constant dense<0.000000e+00> : vector<32xf32>
    %38 = vector.multi_reduction <add>, %37, %cst_4 [1] : vector<32x32xf32> to vector<32xf32>
    %39 = vector.shape_cast %38 : vector<32xf32> to vector<32x1xf32>
    %cst_5 = arith.constant 3.200000e+01 : f32
    %40 = vector.broadcast %cst_5 : f32 to vector<32x1xf32>
    %41 = arith.divf %39, %40 : vector<32x1xf32>
    %42 = arith.mulf %36, %36 : vector<32x1xf32>
    %43 = arith.subf %41, %42 : vector<32x1xf32>
    %cst_6 = arith.constant 0.000000e+00 : f32
    %44 = vector.broadcast %cst_6 : f32 to vector<32x1xf32>
    %45 = arith.maximumf %43, %44 : vector<32x1xf32>
    %46 = vector.broadcast %36 : vector<32x1xf32> to vector<32x32xf32>
    %47 = arith.subf %32, %46 : vector<32x32xf32>
    %cst_7 = arith.constant 9.99999996E-13 : f32
    %48 = vector.broadcast %cst_7 : f32 to vector<32x1xf32>
    %49 = arith.addf %45, %48 : vector<32x1xf32>
    %50 = math.rsqrt %49 : vector<32x1xf32>
    %51 = vector.broadcast %50 : vector<32x1xf32> to vector<32x32xf32>
    %52 = arith.mulf %47, %51 : vector<32x32xf32>
    %53 = vector.broadcast %3 : vector<1x32xf32> to vector<32x32xf32>
    %54 = arith.mulf %52, %53 : vector<32x32xf32>
    %55 = vector.broadcast %4 : vector<1x32xf32> to vector<32x32xf32>
    %56 = arith.addf %54, %55 : vector<32x32xf32>
    %c0_8 = arith.constant 0 : index
    %c0_9 = arith.constant 0 : index
    %57 = vector.load %arg3[%c0_8, %c0_9] : memref<32x32xf32, #tpu.memory_space<vmem>>, vector<32x32xf32>
    tpu.vector_store %arg3[%c0_8, %c0_9], %56 {strides = array<i32>} : memref<32x32xf32, #tpu.memory_space<vmem>>, vector<32x32xf32>,
    return
  }
  func.func @transform_0(%arg0: i32) -> (i32, i32) {
    %c0_i32 = arith.constant 0 : i32
    %c0_i32_0 = arith.constant 0 : i32
    return %arg0, %c0_i32 : i32, i32
  }
  func.func @transform_1(%arg0: i32) -> (i32, i32) {
    %c0_i32 = arith.constant 0 : i32
    %c0_i32_0 = arith.constant 0 : i32
    %c0_i32_1 = arith.constant 0 : i32
    return %c0_i32, %c0_i32_0 : i32, i32
  }
  func.func @transform_2(%arg0: i32) -> (i32, i32) {
    %c0_i32 = arith.constant 0 : i32
    %c0_i32_0 = arith.constant 0 : i32
    return %arg0, %c0_i32 : i32, i32
  }
}

</mosaic_0001>

<bundles_post_ra>
// kernel: tpu_custom_call.1
= control target key start
LH: loop header
LB: loop body
LE: loop exit
PB: predicated region body
PF: predicated region fallthrough
CT: control target
= control target key end

     0   :  { %v760_v2 = vmov 0   ;;  %s1227_s0 = inlined_call_operand.vmem [shape: f32[32,4], index: 0, kind: input, shape index: {}]   ;;  %s1228_s1 = inlined_call_operand.vmem [shape: f32[8,32], index: 1, kind: input, shape index: {}]   ;;  %s1229_s2 = inlined_call_operand.hbm [shape: f32[32,32], index: 2, kind: output, shape index: {}]  }
   0x1   :  { %v14_v0 = vld [vmem:[%s1227_s0 + $0x10] sm:$0xff]  ;;  %v12_v1 = vld [vmem:[%s1227_s0] sm:$0xff]  ;;  %705 = vset.pattern.permute.xlu1 %v760_v2  ;;  %704 = vset.pattern.permute.xlu0 %v760_v2 }
   0x2   :  { %7 = vsyncpa [#allocation3], 0  ;;  %33 = vperm.xlu1 %705, %v14_v0   ;;  %23 = vperm.xlu0 %704, %v12_v1   ;;  %v15_v3 = vld [vmem:[%s1227_s0 + $0x18] sm:$0xff]  ;;  %v13_v4 = vld [vmem:[%s1227_s0 + $0x8] sm:$0xff]  ;;  %v761_v5 = vmov 1   ;;  %v762_v6 = vmov 2   ;;  %v41_v8 = vlaneseq }
   0x3   :  { %v763_v7 = vmov 3   ;;  %v805_v14 = vld [vmem:[%s1228_s1] sm:$0xff]  ;;  %s770_s1 = smov [#allocation2]  }
   0x4   :  { %v800_v11 = vshrl.u32 %v41_v8, 7  ;;  %v18_v15 = vrot.slane %v805_v14, 3  ;;  %s648_s18 = sshll.u32 %s770_s1, 4  ;;  %s649_s18 = int_to_ptr.vmem [resolvable:$true] %s648_s18 }
   0x5   :  { %s736_s19 = scalar_lea.vmem %s649_s18, 512  ;;  %p741_p1 = scmp.lt.s32.totalorder %s649_s18, %s649_s18 }
   0x6   :  { %38 = vperm.xlu1 %705, %v15_v3   ;;  %28 = vperm.xlu0 %704, %v13_v4   ;;  %v43_v16 = vsub.s32 0, %v800_v11  ;;  %v75_v19 = vsub.s32 1, %v800_v11  ;;  %v20_v20 = vadd.f32 %v18_v15, %v805_v14  ;;  %v51_v22 = vsub.s32 4, %v800_v11  ;;  %p737_p0 = scmp.ne.s32.totalorder %s649_s18, %s736_s19  ;;  %p742_p2 = scmp.lt.s32.totalorder %s736_s19, %s736_s19 }
   0x7   :  { %v103_v23 = vsub.s32 2, %v800_v11  ;;  %v131_v30 = vsub.s32 3, %v800_v11 }
   0x8   :  { %v44_v21 = vrot.slane %v805_v14, %v43_v16  ;;  %v76_v27 = vrot.slane %v805_v14, %v75_v19  ;;  %v52_v28 = vrot.slane %v20_v20, %v51_v22  ;;  %p743_p3 = por %p742_p2, %p741_p1 }
   0x9   :  { %v104_v29 = vrot.slane %v805_v14, %v103_v23  ;;  %v132_v36 = vrot.slane %v805_v14, %v131_v30 }
   0xa   :  { %707 = vset.pattern.permute.xlu1 %v761_v5  ;;  %706 = vset.pattern.permute.xlu0 %v761_v5  ;;  %p744_p4 = pnand %p743_p3, %p737_p0 }
   0xb   :  { %62 = vperm.xlu1 %707, %v13_v4   ;;  %58 = vperm.xlu0 %706, %v12_v1  }
   0xf   :  { %66 = vperm.xlu1 %707, %v14_v0   ;;  %70 = vperm.xlu0 %706, %v15_v3  }
  0x13   :  { %708 = vset.pattern.permute.xlu1 %v762_v6  ;;  %709 = vset.pattern.permute.xlu0 %v762_v6 }
  0x14   :  { %86 = vperm.xlu1 %708, %v12_v1   ;;  %90 = vperm.xlu0 %709, %v13_v4  }
  0x18   :  { %94 = vperm.xlu1 %708, %v14_v0   ;;  %710 = vset.pattern.permute.xlu0 %v763_v7 }
  0x19   :  { %114 = vperm.xlu0 %710, %v12_v1  }
  0x1c   :  { %98 = vperm.xlu1 %708, %v15_v3  }
  0x1d   :  { %126 = vperm.xlu0 %710, %v15_v3  }
  0x20   :  { %711 = vset.pattern.permute.xlu1 %v763_v7 }
  0x21   :  { %118 = vperm.xlu1 %711, %v13_v4  }
  0x25   :  { %122 = vperm.xlu1 %711, %v14_v0  }
  0x81   :  { %v34_v9 = vpop.permute.xlu1 %33  ;;  %v24_v10 = vpop.permute.xlu0 %23 }
  0x82   :  { %v45_v26 = vmul.f32 %v44_v21, %v24_v10  ;;  %v47_v56 = vmul.f32 %v44_v21, %v34_v9 }
  0x84   :  { %v53_v31 = vadd.f32 %v52_v28, %v45_v26  ;;  %v55_v2 = vadd.f32 %v52_v28, %v47_v56 }
  0x85   :  { %v39_v12 = vpop.permute.xlu1 %38  ;;  %v29_v13 = vpop.permute.xlu0 %28 }
  0x86   :  { %v48_v37 = vmul.f32 %v44_v21, %v39_v12  ;;  %v46_v38 = vmul.f32 %v44_v21, %v29_v13 }
  0x88   :  { %v56_v45 = vadd.f32 %v52_v28, %v48_v37  ;;  %v54_v46 = vadd.f32 %v52_v28, %v46_v38  ;;  %v766_v38 = vmov 2102212464  }
  0x8a   :  { %v63_v17 = vpop.permute.xlu1 %62  ;;  %v59_v18 = vpop.permute.xlu0 %58 }
  0x8b   :  { %v77_v32 = vmul.f32 %v76_v27, %v59_v18  ;;  %v78_v47 = vmul.f32 %v76_v27, %v63_v17 }
  0x8d   :  { %v81_v39 = vadd.f32 %v77_v32, %v53_v31  ;;  %v82_v58 = vadd.f32 %v78_v47, %v54_v46  ;;  %v768_v47 = vmov 2131351028  }
  0x8e   :  { %v67_v24 = vpop.permute.xlu1 %66  ;;  %v71_v25 = vpop.permute.xlu0 %70 }
  0x8f   :  { %v80_v41 = vmul.f32 %v76_v27, %v71_v25  ;;  %v79_v60 = vmul.f32 %v76_v27, %v67_v24 }
  0x91   :  { %v84_v50 = vadd.f32 %v80_v41, %v56_v45  ;;  %v83_v8 = vadd.f32 %v79_v60, %v55_v2  ;;  %v767_v45 = vmov 2475754826  }
  0x93   :  { %v87_v33 = vpop.permute.xlu1 %86  ;;  %v91_v34 = vpop.permute.xlu0 %90 }
  0x94   :  { %v105_v35 = vmul.f32 %v104_v29, %v87_v33  ;;  %v106_v53 = vmul.f32 %v104_v29, %v91_v34  ;;  %v764_v33 = vmov 920167782  }
  0x96   :  { %v109_v43 = vadd.f32 %v105_v35, %v81_v39  ;;  %v110_v63 = vadd.f32 %v106_v53, %v82_v58  ;;  %v765_v35 = vmov 1326507024  }
  0x97   :  { %v95_v40 = vpop.permute.xlu1 %94 }
  0x98   :  { %v115_v42 = vpop.permute.xlu0 %114  ;;  %v107_v3 = vmul.f32 %v104_v29, %v95_v40 }
  0x99   :  { %v133_v44 = vmul.f32 %v132_v36, %v115_v42 }
  0x9a   :  { %v111_v15 = vadd.f32 %v107_v3, %v83_v8 }
  0x9b   :  { %v818_v48 = vadd.f32 %v133_v44, %v109_v43  ;;  %v99_v49 = vpop.permute.xlu1 %98 }
  0x9c   :  { %v108_v51 = vmul.f32 %v104_v29, %v99_v49  ;;  %v127_v52 = vpop.permute.xlu0 %126 }
  0x9d   :  { %v144_v54 = vand.u32 2139095040, %v818_v48  ;;  %v136_v55 = vmul.f32 %v132_v36, %v127_v52  ;;  %v141_v5 = vand.u32 2147483647, %v818_v48  ;;  %v769_v52 = vmov 683565275  }
  0x9e   :  { %v112_v57 = vadd.f32 %v108_v51, %v84_v50 }
  0x9f   :  { %v145_v59 = vshrl.u32 %v144_v54, 23  ;;  %v148_v18 = vand.u32 8388607, %v141_v5 }
  0xa0   :  { %v821_v61 = vadd.f32 %v136_v55, %v112_v57  ;;  %v119_v62 = vpop.permute.xlu1 %118 }
  0xa1   :  { %v659_v0 = vadd.s32 4294967169, %v145_v59  ;;  %v134_v1 = vmul.f32 %v132_v36, %v119_v62  ;;  %v149_v25 = vor.u32 8388608, %v148_v18 }
  0xa2   :  { %v456_v4 = vand.u32 2139095040, %v821_v61  ;;  %v453_v23 = vand.u32 2147483647, %v821_v61 }
  0xa3   :  { %v151_v6 = vadd.s32 1, %v659_v0  ;;  %v825_v7 = vadd.f32 %v134_v1, %v110_v63  ;;  %v838_v32 = vshll.u32 %v149_v25, 8 }
  0xa4   :  { %v457_v9 = vshrl.u32 %v456_v4, 23  ;;  %v123_v10 = vpop.permute.xlu1 %122  ;;  %v460_v30 = vand.u32 8388607, %v453_v23 }
  0xa5   :  { %vm152_vm0 = vcmp.gt.s32.totalorder %v151_v6, 0  ;;  %v248_v12 = vand.u32 2139095040, %v825_v7  ;;  %v135_v13 = vmul.f32 %v132_v36, %v123_v10  ;;  %v245_v37 = vand.u32 2147483647, %v825_v7 }
  0xa6   :  { %v153_v16 = vsel %vm152_vm0, %v151_v6, 0  ;;  %v671_v17 = vadd.s32 4294967169, %v457_v9  ;;  %v461_v42 = vor.u32 8388608, %v460_v30 }
  0xa7   :  { %v155_v19 = vand.u32 31, %v153_v16  ;;  %v249_v20 = vshrl.u32 %v248_v12, 23  ;;  %v830_v22 = vadd.f32 %v135_v13, %v111_v15  ;;  %v154_v50 = vshrl.u32 %v153_v16, 5 }
  0xa8   :  { %v463_v21 = vadd.s32 1, %v671_v17  ;;  %v858_v62 = vshll.u32 %v461_v42, 8  ;;  %v862_v63 = vand.u32 8388607, %v245_v37 }
  0xa9   :  { %v663_v24 = vadd.s32 4294967169, %v249_v20  ;;  %v156_v26 = vsub.s32 32, %v155_v19  ;;  %v352_v29 = vand.u32 2139095040, %v830_v22  ;;  %v167_v39 = vshll.u32 %v766_v38, %v155_v19 }
  0xaa   :  { %vm464_vm1 = vcmp.gt.s32.totalorder %v463_v21, 0  ;;  %v170_v40 = vshll.u32 %v764_v33, %v155_v19  ;;  %v158_v53 = vshll.u32 %v769_v52, %v155_v19  ;;  %v161_v57 = vshll.u32 %v767_v45, %v155_v19 }
  0xab   :  { %v465_v27 = vsel %vm464_vm1, %v463_v21, 0  ;;  %v255_v28 = vadd.s32 1, %v663_v24  ;;  %v168_v34 = vshrl.u32 %v764_v33, %v156_v26  ;;  %v171_v36 = vshrl.u32 %v765_v35, %v156_v26 }
  0xac   :  { %v836_v31 = vand.u32 31, %v465_v27  ;;  %v353_v41 = vshrl.u32 %v352_v29, 23  ;;  %v159_v46 = vshrl.u32 %v767_v45, %v156_v26  ;;  %v162_v49 = vshrl.u32 %v768_v47, %v156_v26 }
  0xad   :  { %vm256_vm2 = vcmp.gt.s32.totalorder %v255_v28, 0  ;;  %v850_v51 = vshrl.u32 %v465_v27, 5  ;;  %v165_v54 = vshrl.u32 %v766_v38, %v156_v26  ;;  %v169_v55 = vor.u32 %v168_v34, %v167_v39 }
  0xae   :  { %v846_v43 = vsub.s32 32, %v836_v31  ;;  %v257_v44 = vsel %vm256_vm2, %v255_v28, 0  ;;  %v172_v56 = vor.u32 %v171_v36, %v170_v40  ;;  %v164_v58 = vshll.u32 %v768_v47, %v155_v19 }
  0xaf   :  { %v856_v59 = vand.u32 31, %v257_v44  ;;  %v667_v60 = vadd.s32 4294967169, %v353_v41  ;;  %v160_v1 = vor.u32 %v159_v46, %v158_v53  ;;  %v163_v2 = vor.u32 %v162_v49, %v161_v57 }
  0xb0   :  { %v480_v0 = vshrl.u32 %v764_v33, %v846_v43  ;;  %v166_v3 = vor.u32 %v165_v54, %v164_v58  ;;  %vm176_vm3 = vcmp.lt.s32.totalorder %v154_v50, 4  ;;  %v479_v4 = vshll.u32 %v766_v38, %v836_v31 }
  0xb1   :  { %v483_v6 = vshrl.u32 %v765_v35, %v846_v43  ;;  %v157_v8 = vshrl.u32 %v769_v52, %v156_v26  ;;  %v182_v9 = vsel %vm176_vm3, %v169_v55, 920167782  ;;  %v186_v10 = vsel %vm176_vm3, %v172_v56, 1326507024 }
  0xb2   :  { %v482_v12 = vshll.u32 %v764_v33, %v836_v31  ;;  %vm488_vm4 = vcmp.lt.s32.totalorder %v850_v51, 4  ;;  %v874_v13 = vshrl.u32 %v257_v44, 5  ;;  %v877_v15 = vsub.s32 32, %v856_v59 }
  0xb3   :  { %v879_v16 = vadd.s32 1, %v667_v60  ;;  %vm173_vm5 = vcmp.lt.s32.totalorder %v154_v50, 1  ;;  %v481_v17 = vor.u32 %v480_v0, %v479_v4  ;;  %vm175_vm6 = vcmp.lt.s32.totalorder %v154_v50, 3 }
  0xb4   :  { %v178_v18 = vsel %vm176_vm3, %v166_v3, 2102212464  ;;  %v181_v19 = vsel %vm173_vm5, %v160_v1, %v163_v2  ;;  %v484_v20 = vor.u32 %v483_v6, %v482_v12  ;;  %vm174_vm7 = vcmp.lt.s32.totalorder %v154_v50, 2 }
  0xb5   :  { %v177_v21 = vsel %vm173_vm5, %v157_v8, %v160_v1  ;;  %v183_v24 = vsel %vm175_vm6, %v166_v3, %v182_v9  ;;  %v179_v25 = vsel %vm175_vm6, %v163_v2, %v178_v18  ;;  %v185_v27 = vsel %vm173_vm5, %v163_v2, %v166_v3 }
  0xb6   :  { %v184_v26 = vsel %vm174_vm7, %v181_v19, %v183_v24  ;;  %v187_v28 = vsel %vm175_vm6, %v169_v55, %v186_v10  ;;  %v271_v29 = vshll.u32 %v766_v38, %v856_v59  ;;  %v272_v30 = vshrl.u32 %v764_v33, %v877_v15 }
  0xb7   :  { %v888_v34 = vshll.u32 %v764_v33, %v856_v59  ;;  %v188_v36 = vsel %vm174_vm7, %v185_v27, %v187_v28  ;;  %v896_v41 = vmul.u32.u64.low %v838_v32, %v184_v26  ;;  %v897_v42 = vmul.u32.u64.high %v838_v32, %v184_v26, %v896_v41 }
  0xb8   :  { %v892_v39 = vmul.u32.u64.low %v838_v32, %v188_v36  ;;  %v893_v40 = vmul.u32.u64.high %v838_v32, %v188_v36, %v892_v39  ;;  %v494_v44 = vsel %vm488_vm4, %v481_v17, 920167782  ;;  %v498_v46 = vsel %vm488_vm4, %v484_v20, 1326507024 }
  0xb9   :  { %vm360_vm8 = vcmp.gt.s32.totalorder %v879_v16, 0  ;;  %v180_v49 = vsel %vm174_vm7, %v177_v21, %v179_v25  ;;  %v275_v53 = vshrl.u32 %v765_v35, %v877_v15  ;;  %v470_v54 = vshll.u32 %v769_v52, %v836_v31 }
  0xba   :  { %v471_v55 = vshrl.u32 %v767_v45, %v846_v43  ;;  %v474_v56 = vshrl.u32 %v768_v47, %v846_v43  ;;  %v914_v57 = vor.u32 %v272_v30, %v271_v29  ;;  %v473_v58 = vshll.u32 %v767_v45, %v836_v31 }
  0xbb   :  { %v476_v50 = vshll.u32 %v768_v47, %v836_v31  ;;  %v477_v60 = vshrl.u32 %v766_v38, %v846_v43  ;;  %v196_v0 = vmul.u32 %v838_v32, %v180_v49  ;;  %vm198_vm9 = vc.u32 %v893_v40, %v896_v41 }
  0xbc   :  { %v199_v1 = vadd.s32 1, %v897_v42  ;;  %v472_v2 = vor.u32 %v471_v55, %v470_v54  ;;  %v469_v3 = vshrl.u32 %v769_v52, %v846_v43  ;;  %v475_v4 = vor.u32 %v474_v56, %v473_v58 }
  0xbd   :  { %v478_v6 = vor.u32 %v477_v60, %v476_v50  ;;  %vm487_vm10 = vcmp.lt.s32.totalorder %v850_v51, 3  ;;  %vm485_vm11 = vcmp.lt.s32.totalorder %v850_v51, 1  ;;  %vm486_vm12 = vcmp.lt.s32.totalorder %v850_v51, 2 }
  0xbe   :  { %v200_v31 = vsel %vm198_vm9, %v199_v1, %v897_v42  ;;  %v499_v32 = vsel %vm487_vm10, %v481_v17, %v498_v46  ;;  %v493_v10 = vsel %vm485_vm11, %v472_v2, %v475_v4  ;;  %v276_v18 = vor.u32 %v275_v53, %v888_v34 }
  0xbf   :  { %v201_v8 = vadd.s32 %v200_v31, %v196_v0  ;;  %v490_v9 = vsel %vm488_vm4, %v478_v6, 2102212464  ;;  %v495_v12 = vsel %vm487_vm10, %v478_v6, %v494_v44  ;;  %v489_v43 = vsel %vm485_vm11, %v469_v3, %v472_v2 }
  0xc0   :  { %v496_v19 = vsel %vm486_vm12, %v493_v10, %v495_v12  ;;  %v497_v20 = vsel %vm485_vm11, %v475_v4, %v478_v6  ;;  %v491_v24 = vsel %vm487_vm10, %v475_v4, %v490_v9  ;;  %v263_v17 = vshrl.u32 %v767_v45, %v877_v15 }
  0xc1   :  { %v202_v21 = vadd.s32 536870912, %v201_v8  ;;  %v500_v25 = vsel %vm486_vm12, %v497_v20, %v499_v32  ;;  %v946_v28 = vmul.u32.u64.low %v858_v62, %v496_v19  ;;  %v947_v29 = vmul.u32.u64.high %v858_v62, %v496_v19, %v946_v28 }
  0xc2   :  { %v942_v26 = vmul.u32.u64.low %v858_v62, %v500_v25  ;;  %v943_v27 = vmul.u32.u64.high %v858_v62, %v500_v25, %v942_v26  ;;  %v262_v34 = vshll.u32 %v769_v52, %v856_v59  ;;  %v265_v36 = vshll.u32 %v767_v45, %v856_v59 }
  0xc3   :  { %v950_v30 = vshrl.u32 %v202_v21, 30  ;;  %v266_v39 = vshrl.u32 %v768_v47, %v877_v15  ;;  %v361_v42 = vsel %vm360_vm8, %v879_v16, 0  ;;  %v492_v44 = vsel %vm486_vm12, %v489_v43, %v491_v24 }
  0xc4   :  { %v268_v46 = vshll.u32 %v768_v47, %v856_v59  ;;  %v269_v49 = vshrl.u32 %v766_v38, %v877_v15  ;;  %vm280_vm13 = vcmp.lt.s32.totalorder %v874_v13, 4  ;;  %v264_v54 = vor.u32 %v263_v17, %v262_v34 }
  0xc5   :  { %v204_v53 = vshll.u32 %v950_v30, 30  ;;  %v267_v55 = vor.u32 %v266_v39, %v265_v36  ;;  %v286_v56 = vsel %vm280_vm13, %v914_v57, 920167782  ;;  %vm510_vm14 = vc.u32 %v943_v27, %v946_v28 }
  0xc6   :  { %v511_v51 = vadd.s32 1, %v947_v29  ;;  %v270_v16 = vor.u32 %v269_v49, %v268_v46  ;;  %v290_v59 = vsel %vm280_vm13, %v276_v18, 1326507024  ;;  %v977_v58 = vand.u32 31, %v361_v42 }
  0xc7   :  { %v205_v50 = vsub.s32 %v201_v8, %v204_v53  ;;  %v508_v60 = vmul.u32 %v858_v62, %v492_v44  ;;  %v253_v1 = vor.u32 8388608, %v862_v63  ;;  %vm277_vm15 = vcmp.lt.s32.totalorder %v874_v13, 1 }
  0xc8   :  { %v512_v0 = vsel %vm510_vm14, %v511_v51, %v947_v29  ;;  %vm279_vm0 = vcmp.lt.s32.totalorder %v874_v13, 3  ;;  %v285_v4 = vsel %vm277_vm15, %v264_v54, %v267_v55  ;;  %vm278_vm1 = vcmp.lt.s32.totalorder %v874_v13, 2 }
  0xc9   :  { %v207_v2 = vsub.s32 0, %v205_v50  ;;  %v513_v3 = vadd.s32 %v512_v0, %v508_v60  ;;  %v287_v6 = vsel %vm279_vm0, %v270_v16, %v286_v56  ;;  %v289_v62 = vsel %vm277_vm15, %v267_v55, %v270_v16 }
  0xca   :  { %v291_v63 = vsel %vm279_vm0, %v914_v57, %v290_v59  ;;  %v995_v31 = vsub.s32 32, %v977_v58  ;;  %v261_v10 = vshrl.u32 %v769_v52, %v877_v15  ;;  %v282_v12 = vsel %vm280_vm13, %v270_v16, 2102212464 }
  0xcb   :  { %v660_v32 = vmin.u32 %v207_v2, %v205_v50  ;;  %v514_v8 = vadd.s32 536870912, %v513_v3  ;;  %v292_v9 = vsel %vm278_vm1, %v289_v62, %v291_v63  ;;  %v288_v18 = vsel %vm278_vm1, %v285_v4, %v287_v6 }
  0xcc   :  { %v293_v43 = vshll.u32 %v253_v1, 8  ;;  %v281_v20 = vsel %vm277_vm15, %v261_v10, %v264_v54  ;;  %v283_v15 = vsel %vm279_vm0, %v267_v55, %v282_v12  ;;  %v376_v29 = vshrl.u32 %v764_v33, %v995_v31 }
  0xcd   :  { %v209_v19 = vclz %v660_v32  ;;  %v1005_v57 = vshrl.u32 %v514_v8, 30  ;;  %vm1022_vm2 = vcmp.le.f32.partialorder %v141_v5, 0.7853982  ;;  %vm143_vm3 = vcmp.lt.s32.totalorder %v818_v48, 0 }
  0xce   :  { %v1009_v21 = vmul.u32.u64.low %v293_v43, %v292_v9  ;;  %v1010_v24 = vmul.u32.u64.high %v293_v43, %v292_v9, %v1009_v21  ;;  %v1014_v17 = vmul.u32.u64.low %v293_v43, %v288_v18  ;;  %v1015_v26 = vmul.u32.u64.high %v293_v43, %v288_v18, %v1014_v17 }
  0xcf   :  { %v661_v25 = vadd.s32 4294967294, %v209_v19  ;;  %v516_v36 = vshll.u32 %v1005_v57, 30  ;;  %v1028_v39 = vshrl.u32 %v361_v42, 5  ;;  %v375_v44 = vshll.u32 %v766_v38, %v977_v58 }
  0xd0   :  { %v378_v46 = vshll.u32 %v764_v33, %v977_v58  ;;  %v227_v53 = vsub.s32 4, %v950_v30  ;;  %v284_v54 = vsel %vm278_vm1, %v281_v20, %v283_v15  ;;  %v379_v55 = vshrl.u32 %v765_v35, %v995_v31 }
  0xd1   :  { %vm662_vm4 = vcmp.lt.s32.totalorder %v661_v25, 0  ;;  %v1035_v5 = vsub.s32 %v513_v3, %v516_v36  ;;  %v197_v42 = vadd.s32 %v896_v41, %v893_v40  ;;  %v377_v16 = vor.u32 %v376_v29, %v375_v44 }
  0xd2   :  { %v212_v49 = vsel %vm662_vm4, 0, %v661_v25  ;;  %vm302_vm5 = vc.u32 %v1010_v24, %v1014_v17  ;;  %v303_v59 = vadd.s32 1, %v1015_v26  ;;  %v300_v1 = vmul.u32 %v293_v43, %v284_v54 }
  0xd3   :  { %v213_v56 = vsub.s32 32, %v212_v49  ;;  %v217_v51 = vsub.s32 4294967266, %v212_v49  ;;  %v519_v33 = vsub.s32 0, %v1035_v5  ;;  %v214_v60 = vshll.u32 %v205_v50, %v212_v49 }
  0xd4   :  { %v228_v35 = vsel %vm143_vm3, %v227_v53, %v950_v30  ;;  %v304_v41 = vsel %vm302_vm5, %v303_v59, %v1015_v26  ;;  %v349_v2 = vand.u32 2147483647, %v830_v22  ;;  %vm384_vm6 = vcmp.lt.s32.totalorder %v1028_v39, 4 }
  0xd5   :  { %v215_v0 = vshrl.u32 %v197_v42, %v213_v56  ;;  %v218_v13 = vadd.s32 127, %v217_v51  ;;  %v672_v40 = vmin.u32 %v519_v33, %v1035_v5  ;;  %v305_v6 = vadd.s32 %v304_v41, %v300_v1 }
  0xd6   :  { %v380_v62 = vor.u32 %v379_v55, %v378_v46  ;;  %v390_v50 = vsel %vm384_vm6, %v377_v16, 920167782  ;;  %v367_v32 = vshrl.u32 %v767_v45, %v995_v31  ;;  %v230_v8 = vsel %vm1022_vm2, 0, %v228_v35 }
  0xd7   :  { %v216_v3 = vor.u32 %v215_v0, %v214_v60  ;;  %v219_v4 = vshll.u32 %v218_v13, 23  ;;  %v521_v63 = vclz %v672_v40  ;;  %v306_v9 = vadd.s32 536870912, %v305_v6 }
  0xd8   :  { %v370_v10 = vshrl.u32 %v768_v47, %v995_v31  ;;  %v356_v18 = vand.u32 8388607, %v349_v2  ;;  %v366_v43 = vshll.u32 %v769_v52, %v977_v58  ;;  %v369_v19 = vshll.u32 %v767_v45, %v977_v58 }
  0xd9   :  { %v220_v30 = vor.u32 4788187, %v219_v4  ;;  %v673_v12 = vadd.s32 4294967294, %v521_v63  ;;  %v223_v21 = vcvt.s32.f32 %v216_v3  ;;  %v1068_v25 = vshrl.u32 %v306_v9, 30 }
  0xda   :  { %v373_v15 = vshrl.u32 %v766_v38, %v995_v31  ;;  %v394_v26 = vsel %vm384_vm6, %v380_v62, 1326507024  ;;  %v368_v29 = vor.u32 %v367_v32, %v366_v43  ;;  %v372_v36 = vshll.u32 %v768_v47, %v977_v58 }
  0xdb   :  { %v221_v20 = vand.u32 2147483647, %v220_v30  ;;  %vm674_vm7 = vcmp.lt.s32.totalorder %v673_v12, 0  ;;  %v308_v49 = vshll.u32 %v1068_v25, 30  ;;  %v371_v45 = vor.u32 %v370_v10, %v369_v19 }
  0xdc   :  { %v524_v46 = vsel %vm674_vm7, 0, %v673_v12  ;;  %v234_v53 = vadd.s32 3, %v230_v8  ;;  %v509_v54 = vadd.s32 %v946_v28, %v943_v27  ;;  %v357_v51 = vor.u32 8388608, %v356_v18 }
  0xdd   :  { %v224_v44 = vmul.f32 %v223_v21, %v221_v20  ;;  %v525_v55 = vsub.s32 32, %v524_v46  ;;  %v529_v42 = vsub.s32 4294967266, %v524_v46  ;;  %v1079_v56 = vsub.s32 %v305_v6, %v308_v49 }
  0xde   :  { %v374_v33 = vor.u32 %v373_v15, %v372_v36  ;;  %v526_v59 = vshll.u32 %v1035_v5, %v524_v46  ;;  %vm381_vm8 = vcmp.lt.s32.totalorder %v1028_v39, 1  ;;  %vm383_vm9 = vcmp.lt.s32.totalorder %v1028_v39, 3 }
  0xdf   :  { %v225_v38 = vxor.u32 2147483648, %v224_v44  ;;  %v527_v60 = vshrl.u32 %v509_v54, %v525_v55  ;;  %v530_v47 = vadd.s32 127, %v529_v42  ;;  %v311_v0 = vsub.s32 0, %v1079_v56 }
  0xe0   :  { %v389_v27 = vsel %vm381_vm8, %v368_v29, %v371_v45  ;;  %v395_v1 = vsel %vm383_vm9, %v377_v16, %v394_v26  ;;  %v391_v40 = vsel %vm383_vm9, %v374_v33, %v390_v50  ;;  %v393_v41 = vsel %vm381_vm8, %v371_v45, %v374_v33 }
  0xe1   :  { %v226_v58 = vsel %vm143_vm3, %v225_v38, %v224_v44  ;;  %v528_v13 = vor.u32 %v527_v60, %v526_v59  ;;  %v531_v5 = vshll.u32 %v530_v47, 23  ;;  %v664_v35 = vmin.u32 %v311_v0, %v1079_v56 }
  0xe2   :  { %v229_v28 = vsel %vm1022_vm2, %v818_v48, %v226_v58  ;;  %v539_v4 = vsub.s32 4, %v1005_v57  ;;  %vm382_vm10 = vcmp.lt.s32.totalorder %v1028_v39, 2  ;;  %v365_v6 = vshrl.u32 %v769_v52, %v995_v31 }
  0xe3   :  { %712 = vcosq.f32 %v229_v28  ;;  %v532_v3 = vor.u32 4788187, %v531_v5  ;;  %v313_v34 = vclz %v664_v35  ;;  %v386_v16 = vsel %vm384_vm6, %v374_v33, 2102212464 }
  0xe4   :  { %714 = vsinq.f32 %v229_v28  ;;  %v396_v62 = vsel %vm382_vm10, %v393_v41, %v395_v1  ;;  %v535_v63 = vcvt.s32.f32 %v528_v13  ;;  %v392_v32 = vsel %vm382_vm10, %v389_v27, %v391_v40 }
  0xe5   :  { %v533_v50 = vand.u32 2147483647, %v532_v3  ;;  %v397_v30 = vshll.u32 %v357_v51, 8  ;;  %v235_v8 = vand.u32 3, %v234_v53  ;;  %v665_v9 = vadd.s32 4294967294, %v313_v34 }
  0xe6   :  { %v385_v10 = vsel %vm381_vm8, %v365_v6, %v368_v29  ;;  %v387_v52 = vsel %vm383_vm9, %v371_v45, %v386_v16  ;;  %vm455_vm11 = vcmp.lt.s32.totalorder %v821_v61, 0  ;;  %vm1123_vm13 = vcmp.le.f32.partialorder %v453_v23, 0.7853982 }
  0xe7   :  { %v536_v12 = vmul.f32 %v535_v63, %v533_v50  ;;  %v1113_v31 = vmul.u32.u64.low %v397_v30, %v396_v62  ;;  %v1114_v18 = vmul.u32.u64.high %v397_v30, %v396_v62, %v1113_v31  ;;  %vm666_vm12 = vcmp.lt.s32.totalorder %v665_v9, 0 }
  0xe8   :  { %v1117_v43 = vmul.u32.u64.low %v397_v30, %v392_v32  ;;  %v1118_v19 = vmul.u32.u64.high %v397_v30, %v392_v32, %v1117_v43  ;;  %v540_v15 = vsel %vm455_vm11, %v539_v4, %v1005_v57  ;;  %v316_v26 = vsel %vm666_vm12, 0, %v665_v9 }
  0xe9   :  { %v537_v21 = vxor.u32 2147483648, %v536_v12  ;;  %v301_v29 = vadd.s32 %v1014_v17, %v1010_v24  ;;  %v317_v36 = vsub.s32 32, %v316_v26  ;;  %v321_v44 = vsub.s32 4294967266, %v316_v26 }
  0xea   :  { %v388_v46 = vsel %vm382_vm10, %v385_v10, %v387_v52  ;;  %vm240_vm14 = vcmp.eq.s32.totalorder %v235_v8, 2  ;;  %v318_v45 = vshll.u32 %v1079_v56, %v316_v26  ;;  %vm406_vm15 = vc.u32 %v1114_v18, %v1117_v43 }
  0xeb   :  { %v538_v49 = vsel %vm455_vm11, %v537_v21, %v536_v12  ;;  %v319_v53 = vshrl.u32 %v301_v29, %v317_v36  ;;  %v322_v54 = vadd.s32 127, %v321_v44  ;;  %v407_v24 = vadd.s32 1, %v1118_v19 }
  0xec   :  { %v541_v57 = vsel %vm1123_vm13, %v821_v61, %v538_v49  ;;  %v542_v39 = vsel %vm1123_vm13, 0, %v540_v15  ;;  %v404_v42 = vmul.u32 %v397_v30, %v388_v46  ;;  %vm237_vm0 = vcmp.eq.s32.totalorder %v235_v8, 0 }
  0xed   :  { %v713_v23 = vpop.eup %712  ;;  %716 = vcosq.f32 %v541_v57  ;;  %v320_v56 = vor.u32 %v319_v53, %v318_v45  ;;  %v323_v51 = vshll.u32 %v322_v54, 23  ;;  %vm557_vm1 = vcmask 261120  }
  0xee   :  { %v715_v17 = vpop.eup %714  ;;  %v241_v55 = vxor.u32 2147483648, %v713_v23  ;;  %718 = vsinq.f32 %v541_v57  ;;  %v408_v59 = vsel %vm406_vm15, %v407_v24, %v1118_v19  ;;  %vm236_vm2 = vcmp.lt.s32.totalorder %v235_v8, 2 }
  0xef   :  { %v238_v38 = vxor.u32 2147483648, %v715_v17  ;;  %v324_v47 = vor.u32 4788187, %v323_v51  ;;  %v409_v58 = vadd.s32 %v408_v59, %v404_v42  ;;  %vm233_vm3 = vweird.f32 %v818_v48 }
  0xf0   :  { %v242_v33 = vsel %vm240_vm14, %v241_v55, %v715_v17  ;;  %v546_v27 = vadd.s32 3, %v542_v39  ;;  %v327_v5 = vcvt.s32.f32 %v320_v56  ;;  %v331_v40 = vsub.s32 4, %v1068_v25 }
  0xf1   :  { %v239_v60 = vsel %vm237_vm0, %v713_v23, %v238_v38  ;;  %v325_v13 = vand.u32 2147483647, %v324_v47  ;;  %v410_v1 = vadd.s32 536870912, %v409_v58  ;;  %vm247_vm4 = vcmp.lt.s32.totalorder %v825_v7, 0 }
  0xf2   :  { %v243_v0 = vsel %vm236_vm2, %v239_v60, %v242_v33  ;;  %v547_v4 = vand.u32 3, %v546_v27  ;;  %v332_v16 = vsel %vm247_vm4, %v331_v40, %v1068_v25  ;;  %vm1159_vm5 = vcmp.le.f32.partialorder %v245_v37, 0.7853982 }
  0xf3   :  { %v1147_v28 = vsel %vm233_vm3, nan, %v243_v0  ;;  %v328_v41 = vmul.f32 %v327_v5, %v325_v13  ;;  %v1152_v3 = vshrl.u32 %v410_v1, 30  ;;  %v334_v25 = vsel %vm1159_vm5, 0, %v332_v16 }
  0xf4   :  { %v558_v35 = vsel %vm557_vm1, %v1147_v28, 0.0  ;;  %vm549_vm6 = vcmp.eq.s32.totalorder %v547_v4, 0  ;;  %vm552_vm7 = vcmp.eq.s32.totalorder %v547_v4, 2  ;;  %vm548_vm8 = vcmp.lt.s32.totalorder %v547_v4, 2 }
  0xf5   :  { %559 = vadd.xlane.f32.xlu1 %v558_v35  ;;  %v329_v48 = vxor.u32 2147483648, %v328_v41  ;;  %v412_v34 = vshll.u32 %v1152_v3, 30  ;;  %vm545_vm9 = vweird.f32 %v821_v61  ;;  %v338_v20 = vadd.s32 3, %v334_v25 }
  0xf6   :  { %v405_v46 = vadd.s32 %v1117_v43, %v1114_v18  ;;  %vm337_vm14 = vweird.f32 %v825_v7  ;;  %vm351_vm15 = vcmp.lt.s32.totalorder %v830_v22, 0  ;;  %vm350_vm0 = vcmp.le.f32.partialorder %v349_v2, 0.7853982 }
  0xf7   :  { %v717_v6 = vpop.eup %716  ;;  %v330_v32 = vsel %vm247_vm4, %v329_v48, %v328_v41  ;;  %v413_v30 = vsub.s32 %v409_v58, %v412_v34  ;;  %v339_v29 = vand.u32 3, %v338_v20  ;;  %v435_v58 = vsub.s32 4, %v1152_v3 }
  0xf8   :  { %v719_v62 = vpop.eup %718  ;;  %v553_v50 = vxor.u32 2147483648, %v717_v6  ;;  %v333_v9 = vsel %vm1159_vm5, %v825_v7, %v330_v32  ;;  %vm441_vm5 = vweird.f32 %v830_v22  ;;  %v575_v63 = vmul.f32 %v1147_v28, %v1147_v28 }
  0xf9   :  { %v550_v8 = vxor.u32 2147483648, %v719_v62  ;;  %720 = vcosq.f32 %v333_v9  ;;  %v415_v12 = vsub.s32 0, %v413_v30  ;;  %vm344_vm11 = vcmp.eq.s32.totalorder %v339_v29, 2 }
  0xfa   :  { %v554_v10 = vsel %vm552_vm7, %v553_v50, %v719_v62  ;;  %722 = vsinq.f32 %v333_v9  ;;  %vm341_vm12 = vcmp.eq.s32.totalorder %v339_v29, 0  ;;  %vm340_vm13 = vcmp.lt.s32.totalorder %v339_v29, 2 }
  0xfb   :  { %v551_v37 = vsel %vm549_vm6, %v717_v6, %v550_v8  ;;  %v668_v31 = vmin.u32 %v415_v12, %v413_v30  ;;  %v436_v5 = vsel %vm351_vm15, %v435_v58, %v1152_v3  ;;  %v579_v32 = vsel %vm557_vm1, %v575_v63, 0.0 }
  0xfc   :  { %v555_v52 = vsel %vm548_vm8, %v551_v37, %v554_v10  ;;  %v438_v35 = vsel %vm350_vm0, 0, %v436_v5 }
  0xfd   :  { %v1169_v19 = vsel %vm545_vm9, nan, %v555_v52  ;;  %v417_v15 = vclz %v668_v31  ;;  %v442_v40 = vadd.s32 3, %v438_v35 }
  0xfe   :  { %v567_v21 = vsel %vm557_vm1, %v1169_v19, 0.0  ;;  %v578_v47 = vmul.f32 %v1169_v19, %v1169_v19 }
  0xff   :  { %568 = vadd.xlane.f32.xlu1 %v567_v21  ;;  %v669_v26 = vadd.s32 4294967294, %v417_v15  ;;  %v443_v41 = vand.u32 3, %v442_v40 }
 0x100   :  { %v588_v27 = vsel %vm557_vm1, %v578_v47, 0.0 }
 0x101   :  { %vm670_vm10 = vcmp.lt.s32.totalorder %v669_v26, 0  ;;  %vm448_vm2 = vcmp.eq.s32.totalorder %v443_v41, 2  ;;  %vm445_vm3 = vcmp.eq.s32.totalorder %v443_v41, 0  ;;  %vm444_vm4 = vcmp.lt.s32.totalorder %v443_v41, 2 }
 0x102   :  { %v420_v36 = vsel %vm670_vm10, 0, %v669_v26 }
 0x103   :  { %v721_v44 = vpop.eup %720  ;;  %v421_v49 = vsub.s32 32, %v420_v36  ;;  %v425_v61 = vsub.s32 4294967266, %v420_v36  ;;  %v422_v53 = vshll.u32 %v413_v30, %v420_v36 }
 0x104   :  { %v723_v45 = vpop.eup %722  ;;  %v345_v23 = vxor.u32 2147483648, %v721_v44 }
 0x105   :  { %v342_v57 = vxor.u32 2147483648, %v723_v45  ;;  %v423_v54 = vshrl.u32 %v405_v46, %v421_v49  ;;  %v426_v24 = vadd.s32 127, %v425_v61  ;;  %v625_v61 = vsub.s32 5, %v800_v11 }
 0x106   :  { %v346_v17 = vsel %vm344_vm11, %v345_v23, %v723_v45  ;;  %v633_v45 = vsub.s32 6, %v800_v11 }
 0x107   :  { %v343_v55 = vsel %vm341_vm12, %v721_v44, %v342_v57  ;;  %v424_v39 = vor.u32 %v423_v54, %v422_v53  ;;  %v427_v42 = vshll.u32 %v426_v24, 23  ;;  %v626_v57 = vrot.slane %v805_v14, %v625_v61 }
 0x108   :  { %v347_v38 = vsel %vm340_vm13, %v343_v55, %v346_v17  ;;  %v634_v24 = vrot.slane %v805_v14, %v633_v45 }
 0x109   :  { %v1176_v56 = vsel %vm337_vm14, nan, %v347_v38  ;;  %v428_v18 = vor.u32 4788187, %v427_v42  ;;  %v431_v59 = vcvt.s32.f32 %v424_v39 }
 0x10a   :  { %v561_v43 = vsel %vm557_vm1, %v1176_v56, 0.0  ;;  %v576_v51 = vmul.f32 %v1176_v56, %v1176_v56 }
 0x10b   :  { %562 = vadd.xlane.f32.xlu0 %v561_v43  ;;  %v429_v33 = vand.u32 2147483647, %v428_v18 }
 0x10c   :  { %v582_v60 = vsel %vm557_vm1, %v576_v51, 0.0 }
 0x10d   :  { %583 = vadd.xlane.f32.xlu1 %v582_v60  ;;  %v432_v7 = vmul.f32 %v431_v59, %v429_v33 }
 0x10f   :  { %v433_v0 = vxor.u32 2147483648, %v432_v7 }
 0x111   :  { %v434_v13 = vsel %vm351_vm15, %v433_v0, %v432_v7  ;;  %589 = vadd.xlane.f32.xlu1 %v588_v27 }
 0x112   :  { %v437_v1 = vsel %vm350_vm0, %v830_v22, %v434_v13 }
 0x113   :  { %724 = vcosq.f32 %v437_v1 }
 0x114   :  { %726 = vsinq.f32 %v437_v1 }
 0x11d   :  { %v725_v4 = vpop.eup %724 }
 0x11e   :  { %v727_v48 = vpop.eup %726  ;;  %v449_v34 = vxor.u32 2147483648, %v725_v4 }
 0x11f   :  { %v446_v6 = vxor.u32 2147483648, %v727_v48 }
 0x120   :  { %v450_v16 = vsel %vm448_vm2, %v449_v34, %v727_v48 }
 0x121   :  { %v447_v2 = vsel %vm445_vm3, %v725_v4, %v446_v6 }
 0x122   :  { %v451_v3 = vsel %vm444_vm4, %v447_v2, %v450_v16 }
 0x123   :  { %v1193_v62 = vsel %vm441_vm5, nan, %v451_v3 }
 0x124   :  { %v564_v50 = vsel %vm557_vm1, %v1193_v62, 0.0  ;;  %v577_v30 = vmul.f32 %v1193_v62, %v1193_v62 }
 0x125   :  { %565 = vadd.xlane.f32.xlu0 %v564_v50 }
 0x126   :  { %v585_v8 = vsel %vm557_vm1, %v577_v30, 0.0 }
 0x129   :  { %580 = vadd.xlane.f32.xlu0 %v579_v32 }
 0x12d   :  { %586 = vadd.xlane.f32.xlu0 %v585_v8 }
 0x182   :  { %v560_v22 = vpop.xlane.xlu1 %559 }
 0x183   :  { %v571_v43 = vmul.f32 0.03125, %v560_v22 }
 0x185   :  { %v607_v1 = vsub.f32 %v1147_v28, %v571_v43 }
 0x18c   :  { %v569_v9 = vpop.xlane.xlu1 %568 }
 0x18d   :  { %v574_v37 = vmul.f32 0.03125, %v569_v9 }
 0x18f   :  { %v598_v15 = vmul.f32 %v574_v37, %v574_v37  ;;  %v610_v17 = vsub.f32 %v1169_v19, %v574_v37 }
 0x198   :  { %v563_v10 = vpop.xlane.xlu0 %562 }
 0x199   :  { %v572_v25 = vmul.f32 0.03125, %v563_v10 }
 0x19a   :  { %v584_v12 = vpop.xlane.xlu1 %583 }
 0x19b   :  { %v596_v52 = vmul.f32 %v572_v25, %v572_v25  ;;  %v592_v31 = vmul.f32 0.03125, %v584_v12  ;;  %v608_v23 = vsub.f32 %v1176_v56, %v572_v25  ;;  %v595_v56 = vmul.f32 %v571_v43, %v571_v43 }
 0x19d   :  { %v600_v20 = vsub.f32 %v592_v31, %v596_v52 }
 0x19e   :  { %v590_v21 = vpop.xlane.xlu1 %589 }
 0x19f   :  { %v604_v26 = vmax.f32 %v600_v20, 0.0  ;;  %v594_v29 = vmul.f32 0.03125, %v590_v21 }
 0x1a1   :  { %v612_v36 = vadd.f32 1e-12, %v604_v26  ;;  %v602_v44 = vsub.f32 %v594_v29, %v598_v15 }
 0x1a3   :  { %728 = vrsqrt.f32 %v612_v36  ;;  %v606_v46 = vmax.f32 %v602_v44, 0.0 }
 0x1a5   :  { %v614_v49 = vadd.f32 1e-12, %v606_v46 }
 0x1a7   :  { %730 = vrsqrt.f32 %v614_v49 }
 0x1ad   :  { %v729_v53 = vpop.eup %728 }
 0x1ae   :  { %v620_v54 = vmul.f32 %v729_v53, %v608_v23 }
 0x1b0   :  { %v628_v55 = vmul.f32 %v626_v57, %v620_v54 }
 0x1b1   :  { %v731_v39 = vpop.eup %730 }
 0x1b2   :  { %v566_v42 = vpop.xlane.xlu0 %565  ;;  %v622_v38 = vmul.f32 %v731_v39, %v610_v17  ;;  %v636_v18 = vadd.f32 %v634_v24, %v628_v55 }
 0x1b3   :  { %v573_v59 = vmul.f32 0.03125, %v566_v42 }
 0x1b4   :  { %v630_v51 = vmul.f32 %v626_v57, %v622_v38  ;;  %640 = vst.msk [vmem:[#allocation2 + $0x8] sm:$0xff] %vm557_vm1, %v636_v18 }
 0x1b5   :  { %v597_v7 = vmul.f32 %v573_v59, %v573_v59  ;;  %v609_v41 = vsub.f32 %v1193_v62, %v573_v59 }
 0x1b6   :  { %v581_v11 = vpop.xlane.xlu0 %580  ;;  %v638_v33 = vadd.f32 %v634_v24, %v630_v51 }
 0x1b7   :  { %v591_v60 = vmul.f32 0.03125, %v581_v11 }
 0x1b8   :  { %642 = vst.msk [vmem:[#allocation2 + $0x18] sm:$0xff] %vm557_vm1, %v638_v33 }
 0x1b9   :  { %v599_v47 = vsub.f32 %v591_v60, %v595_v56 }
 0x1ba   :  { %v587_v14 = vpop.xlane.xlu0 %586 }
 0x1bb   :  { %v603_v19 = vmax.f32 %v599_v47, 0.0  ;;  %v593_v58 = vmul.f32 0.03125, %v587_v14 }
 0x1bd   :  { %v611_v0 = vadd.f32 1e-12, %v603_v19  ;;  %v601_v27 = vsub.f32 %v593_v58, %v597_v7 }
 0x1bf   :  { %732 = vrsqrt.f32 %v611_v0  ;;  %v605_v13 = vmax.f32 %v601_v27, 0.0 }
 0x1c1   :  { %v613_v5 = vadd.f32 1e-12, %v605_v13 }
 0x1c3   :  { %734 = vrsqrt.f32 %v613_v5 }
 0x1c9   :  { %v733_v35 = vpop.eup %732 }
 0x1ca   :  { %v619_v40 = vmul.f32 %v733_v35, %v607_v1 }
 0x1cc   :  { %v627_v4 = vmul.f32 %v626_v57, %v619_v40 }
 0x1cd   :  { %v735_v48 = vpop.eup %734 }
 0x1ce   :  { %v621_v34 = vmul.f32 %v735_v48, %v609_v41  ;;  %v635_v6 = vadd.f32 %v634_v24, %v627_v4 }
 0x1d0   :  { %v629_v16 = vmul.f32 %v626_v57, %v621_v34  ;;  %639 = vst.msk [vmem:[#allocation2] sm:$0xff] %vm557_vm1, %v635_v6 }
 0x1d2   :  { %v637_v2 = vadd.f32 %v634_v24, %v629_v16 }
 0x1d4   :  { %641 = vst.msk [vmem:[#allocation2 + $0x10] sm:$0xff] %vm557_vm1, %v637_v2 }
 0x1d5   :  { %747 = shalt.err (!%p744_p4)
}
 0x1d6   :  { %s748_s22 = scalar_lea.hbm %s1229_s2, 512 }
 0x1d7   :  { %p749_p5 = scmp.ne.s32.totalorder %s1229_s2, %s748_s22  ;;  %p752_p6 = scmp.lt.u32.totalorder %s748_s22, %s1229_s2 }
 0x1d9   :  { %p754_p7 = pnand %p752_p6, %p749_p5 }
 0x1db   :  { %757 = shalt.err (!%p754_p7)
}
 0x1dc   :  { %s771_s27 = smov 128   ;;  %s772_s28 = smov 8  }
 0x1dd   :  { %654 = dma.vmem_to_hbm [thread:$0]  %s649_s18, 512, %s1229_s2, [#allocation3], %s771_s27, %s771_s27, %s772_s28  }
 0x1de   :  { %758 = dma.done.wait [#allocation3], 512  }
 0x1df   :  { %759 = vsyncadd [#allocation3], 4294966784 }
 0x1e0   :  { %658 = vsyncpa [#allocation3], 1 }

</bundles_post_ra>
